<compile_context>
chip_gen: v6e
topology: v6e:2x2x1
jax: 0.10.0
libtpu: 0.0.40
codegen_flags: <defaults>
</compile_context>

<pallas_src>
import jax
import jax.numpy as jnp
from jax.experimental import pallas as pl
from jax.experimental.pallas import tpu as pltpu

MiB = 1024 * 1024


def _cdiv(a, b):
    return -(-a // b)


def _round_up(x, m):
    return _cdiv(x, m) * m


def _vmem_capacity_bytes():
    try:
        return int(pltpu.get_tpu_info().vmem_capacity_bytes)
    except Exception:
        return 64 * MiB  # conservative floor (v7x per-TC VMEM)


# ----------------------------- kernels --------------------------------------

def _mlp_kernel_resident(x_ref, w1_ref, b1_ref, w2_ref, b2_ref, w3_ref, b3_ref,
                         y_ref):
    """All weights VMEM-resident; one batch tile per grid step."""
    x = x_ref[...].astype(w1_ref.dtype)
    # Layer 1: Linear + ReLU (dropout1 is identity at inference)
    h = jnp.dot(x, w1_ref[...], preferred_element_type=jnp.float32)
    h = jnp.maximum(h + b1_ref[...], 0.0).astype(w2_ref.dtype)
    # Layer 2: Linear + ReLU (dropout2 is identity at inference)
    h = jnp.dot(h, w2_ref[...], preferred_element_type=jnp.float32)
    h = jnp.maximum(h + b2_ref[...], 0.0).astype(w3_ref.dtype)
    # Layer 3: Linear (module's forward does not apply the sigmoid)
    y = jnp.dot(h, w3_ref[...], preferred_element_type=jnp.float32) + b3_ref[...]
    y_ref[...] = y.astype(y_ref.dtype)


def _mlp_kernel_ktiled(x_ref, w1_ref, b1_ref, w2_ref, b2_ref, w3_ref, b3_ref,
                       y_ref, acc_ref):
    """Layer-1 contraction (in_feature) streamed over the reduction grid axis."""
    k = pl.program_id(1)

    @pl.when(k == 0)
    def _():
        acc_ref[...] = jnp.zeros_like(acc_ref)

    x = x_ref[...].astype(w1_ref.dtype)
    acc_ref[...] += jnp.dot(x, w1_ref[...], preferred_element_type=jnp.float32)

    @pl.when(k == pl.num_programs(1) - 1)
    def _():
        h = jnp.maximum(acc_ref[...] + b1_ref[...], 0.0).astype(w2_ref.dtype)
        h = jnp.dot(h, w2_ref[...], preferred_element_type=jnp.float32)
        h = jnp.maximum(h + b2_ref[...], 0.0).astype(w3_ref.dtype)
        y = jnp.dot(h, w3_ref[...], preferred_element_type=jnp.float32) + b3_ref[...]
        y_ref[...] = y.astype(y_ref.dtype)


# ----------------------------- host wrappers ---------------------------------

def prepare_params(params, *, compute_dtype=jnp.bfloat16):
    """Pad dims to multiples of 128 and cast to the MXU compute dtype ONCE.

    Called outside the per-forward path so inference pays no per-call weight
    padding/casting HBM traffic.  Zero padding is a mathematical no-op (padded
    inputs/hidden units have zero weights and biases, and ReLU(0)=0).
    """
    w1, b1, w2, b2, w3, b3 = params
    F, H = w1.shape
    C = w3.shape[1]
    F_p, H_p, C_p = (_round_up(d, 128) for d in (F, H, C))
    f32 = jnp.float32
    w1p = jnp.zeros((F_p, H_p), compute_dtype).at[:F, :H].set(w1.astype(compute_dtype))
    b1p = jnp.zeros((1, H_p), f32).at[:, :H].set(jnp.reshape(b1, (1, -1)).astype(f32))
    w2p = jnp.zeros((H_p, H_p), compute_dtype).at[:H, :H].set(w2.astype(compute_dtype))
    b2p = jnp.zeros((1, H_p), f32).at[:, :H].set(jnp.reshape(b2, (1, -1)).astype(f32))
    w3p = jnp.zeros((H_p, C_p), compute_dtype).at[:H, :C].set(w3.astype(compute_dtype))
    b3p = jnp.zeros((1, C_p), f32).at[:, :C].set(jnp.reshape(b3, (1, -1)).astype(f32))
    return (w1p, b1p, w2p, b2p, w3p, b3p), (F, H, C, F_p, H_p, C_p)


def multi_adversarial_network_forward(x, prepared, *, max_tile_b=512):
    """Fused 3-layer MLP forward. x: (B, in_feature) f32 -> (B, class_num) f32."""
    padded, dims = prepared
    w1p, b1p, w2p, b2p, w3p, b3p = padded
    F, H, C, F_p, H_p, C_p = dims
    B = x.shape[0]
    assert x.shape[1] == F, (x.shape, F)

    cdt = w1p.dtype
    wbyte = lambda a: int(a.size) * a.dtype.itemsize
    weight_bytes = sum(wbyte(a) for a in padded)
    w1_bytes = wbyte(w1p)
    other_weight_bytes = weight_bytes - w1_bytes

    vmem_cap = _vmem_capacity_bytes()          # 128 MiB v5e/v6e, 64 MiB/TC v7x
    usable = int(vmem_cap * 0.85)              # headroom for compiler scratch
    slack = 2 * MiB

    B_p0 = _round_up(B, 16)                    # bf16 native sublane tile is (16, 128)
    resident = weight_bytes <= int(0.4 * usable)

    if resident:
        # VMEM per batch row: double-buffered x tile + double-buffered f32 out
        # tile + live f32 hidden activations (~2*H_p words). x counted at f32
        # (worst case, in case it is passed unpadded).
        per_row = 2 * F_p * 4 + 2 * C_p * 4 + 2 * H_p * 4
        tile_cap = (usable - weight_bytes - slack) // max(per_row, 1)
        tile_cap = max(16, (tile_cap // 16) * 16)
        # Prefer >= 2 grid steps when the batch allows it so the "parallel"
        # batch axis shards across v7x's two TensorCores.
        tile_b = _round_up(_cdiv(B_p0, 2), 16) if B_p0 >= 32 else B_p0
        tile_b = max(16, min(tile_b, max_tile_b, tile_cap, B_p0))
        n_b = _cdiv(B_p0, tile_b)
        B_p = n_b * tile_b
        tile_f, n_k = F_p, 1
    else:
        # w1 does not comfortably fit in VMEM: stream its contraction axis.
        tile_b = _round_up(_cdiv(B_p0, 2), 16) if B_p0 >= 32 else B_p0
        tile_b = max(16, min(tile_b, 256, B_p0))
        n_b = _cdiv(B_p0, tile_b)
        B_p = n_b * tile_b
        fixed = (other_weight_bytes
                 + tile_b * H_p * 4            # f32 layer-1 accumulator
                 + 2 * tile_b * C_p * 4        # double-buffered out tiles
                 + 2 * tile_b * H_p * 4        # live f32 activations
                 + slack)
        per_f = 2 * H_p * cdt.itemsize + 2 * tile_b * 4   # w1 + x slices, dbl-buffered
        tile_f_max = max(128, ((usable - fixed) // max(per_f, 1)) // 128 * 128)
        # Largest multiple of 128 that divides F_p exactly (avoids re-padding w1).
        tile_f = 128
        cand = min(tile_f_max, F_p)
        while cand >= 128:
            if F_p % cand == 0:
                tile_f = cand
                break
            cand -= 128
        n_k = F_p // tile_f

    # ---- stage x: skip the pad/copy pass when already aligned ---------------
    if B == B_p and F == F_p:
        x_in = x                               # kernel casts to bf16 internally
    else:
        x_in = jnp.zeros((B_p, F_p), cdt).at[:B, :F].set(x.astype(cdt))
    x_itemsize = x_in.dtype.itemsize

    # Advisory cost estimate for XLA's scheduler.
    flops = 2 * B_p * (F_p * H_p + H_p * H_p + H_p * C_p)
    bytes_accessed = (int(x_in.size) * x_itemsize
                      + other_weight_bytes
                      + w1_bytes * (1 if resident else n_b)
                      + B_p * C_p * 4)

    def run(single_buffer):
        if resident:
            cidx = lambda i: (0, 0)
        else:
            cidx = lambda i, k: (0, 0)

        def const_spec(shape):
            if single_buffer:
                # Grid-invariant operand: no point double-buffering it.
                return pl.BlockSpec(shape, cidx, pipeline_mode=pl.Buffered(1))
            return pl.BlockSpec(shape, cidx)

        w_mult = 1 if single_buffer else 2

        if resident:
            in_specs = [
                pl.BlockSpec((tile_b, F_p), lambda i: (i, 0)),   # x: tiled over batch
                const_spec((F_p, H_p)), const_spec((1, H_p)),    # w1, b1
                const_spec((H_p, H_p)), const_spec((1, H_p)),    # w2, b2
                const_spec((H_p, C_p)), const_spec((1, C_p)),    # w3, b3
            ]
            out_specs = pl.BlockSpec((tile_b, C_p), lambda i: (i, 0))
            grid = (n_b,)
            dim_sem = ("parallel",)
            scratch = []
            kernel = _mlp_kernel_resident
            need = (w_mult * weight_bytes
                    + tile_b * (2 * F_p * x_itemsize + 2 * C_p * 4 + 2 * H_p * 4)
                    + slack)
        else:
            in_specs = [
                pl.BlockSpec((tile_b, tile_f), lambda i, k: (i, k)),   # x
                pl.BlockSpec((tile_f, H_p), lambda i, k: (k, 0)),      # streamed w1
                const_spec((1, H_p)),                                   # b1
                const_spec((H_p, H_p)), const_spec((1, H_p)),           # w2, b2
                const_spec((H_p, C_p)), const_spec((1, C_p)),           # w3, b3
            ]
            out_specs = pl.BlockSpec((tile_b, C_p), lambda i, k: (i, 0))
            grid = (n_b, n_k)
            dim_sem = ("parallel", "arbitrary")
            scratch = [pltpu.VMEM((tile_b, H_p), jnp.float32)]
            kernel = _mlp_kernel_ktiled
            need = (w_mult * other_weight_bytes
                    + 2 * tile_f * H_p * cdt.itemsize
                    + tile_b * (2 * tile_f * x_itemsize + 2 * C_p * 4 + 3 * H_p * 4)
                    + slack)

        vmem_limit = int(min(usable, max(16 * MiB, need)))

        return pl.pallas_call(
            kernel,
            out_shape=jax.ShapeDtypeStruct((B_p, C_p), jnp.float32),
            grid_spec=pltpu.PrefetchScalarGridSpec(
                num_scalar_prefetch=0,
                grid=grid,
                in_specs=in_specs,
                out_specs=out_specs,
                scratch_shapes=scratch,
            ),
            compiler_params=pltpu.CompilerParams(
                dimension_semantics=dim_sem,
                vmem_limit_bytes=vmem_limit,
            ),
            cost_estimate=pl.CostEstimate(
                flops=flops, transcendentals=0, bytes_accessed=bytes_accessed),
        )(x_in, w1p, b1p, w2p, b2p, w3p, b3p)

    try:
        y_p = run(single_buffer=True)
    except Exception:
        # Fallback: default (double) buffering if pl.Buffered(1) is rejected
        # by the installed jax/Mosaic build. Correctness is identical.
        y_p = run(single_buffer=False)

    return y_p[:B, :C]


def init_params(key, in_feature, hidden_size, class_num):
    """Deterministic init mimicking init_weights: xavier_normal_ weights, zero biases."""
    def xavier_normal(k, fan_in, fan_out):
        std = jnp.sqrt(2.0 / (fan_in + fan_out))
        # stored as (in, out) so the kernel does x @ W
        return std * jax.random.normal(k, (fan_in, fan_out), dtype=jnp.float32)

    k1, k2, k3 = jax.random.split(key, 3)
    w1 = xavier_normal(k1, in_feature, hidden_size)
    b1 = jnp.zeros((1, hidden_size), jnp.float32)
    w2 = xavier_normal(k2, hidden_size, hidden_size)
    b2 = jnp.zeros((1, hidden_size), jnp.float32)
    w3 = xavier_normal(k3, hidden_size, class_num)
    b3 = jnp.zeros((1, class_num), jnp.float32)
    return (w1, b1, w2, b2, w3, b3)


if __name__ == "__main__":
    key = jax.random.PRNGKey(0)
    kx, kp = jax.random.split(key)

    batch, in_feature, hidden_size, class_num = 16, 32, 32, 4
    x = jax.random.normal(kx, (batch, in_feature), dtype=jnp.float32)
    params = init_params(kp, in_feature, hidden_size, class_num)

    prepared = prepare_params(params)      # padded + cast ONCE, reused per call
    y = multi_adversarial_network_forward(x, prepared)
    y = jax.block_until_ready(y)

    # Pure-JAX f32 reference of the same forward semantics (kernel uses bf16
    # weights/activations with f32 accumulation, so tolerance is loosened).
    w1, b1, w2, b2, w3, b3 = params
    h = jnp.maximum(x @ w1 + b1, 0.0)
    h = jnp.maximum(h @ w2 + b2, 0.0)
    y_ref = h @ w3 + b3
    assert y.shape == (batch, class_num)
    assert jnp.allclose(y, y_ref, atol=5e-2, rtol=5e-2), (
        float(jnp.max(jnp.abs(y - y_ref))))

    # TODO(synk): GRL (gradient reversal hook) and Dropout affect only
    # training/backward; they have no effect on this forward kernel.
    print("KERNEL_OK")
</pallas_src>

<mosaic_0001>
module attributes {stable_mosaic.version = 11 : i64} {
  func.func @_mlp_kernel_resident(%arg0: i32, %arg1: memref<16x128xbf16, #tpu.memory_space<vmem>>, %arg2: memref<128x128xbf16, #tpu.memory_space<vmem>>, %arg3: memref<1x128xf32, #tpu.memory_space<vmem>>, %arg4: memref<128x128xbf16, #tpu.memory_space<vmem>>, %arg5: memref<1x128xf32, #tpu.memory_space<vmem>>, %arg6: memref<128x128xbf16, #tpu.memory_space<vmem>>, %arg7: memref<1x128xf32, #tpu.memory_space<vmem>>, %arg8: memref<16x128xf32, #tpu.memory_space<vmem>>) attributes {dimension_semantics = [#tpu.dimension_semantics<parallel>], iteration_bounds = array<i64: 1>, scalar_prefetch = 0 : i64, scratch_operands = 0 : i64, tpu.core_type = #tpu.core_type<tc>, window_params = [{transform_indices = @transform_0, window_bounds = array<i64: 16, 128>}, {pipeline_mode = #tpu.pipeline_mode<synchronous>, transform_indices = @transform_1, window_bounds = array<i64: 128, 128>}, {pipeline_mode = #tpu.pipeline_mode<synchronous>, transform_indices = @transform_2, window_bounds = array<i64: 1, 128>}, {pipeline_mode = #tpu.pipeline_mode<synchronous>, transform_indices = @transform_3, window_bounds = array<i64: 128, 128>}, {pipeline_mode = #tpu.pipeline_mode<synchronous>, transform_indices = @transform_4, window_bounds = array<i64: 1, 128>}, {pipeline_mode = #tpu.pipeline_mode<synchronous>, transform_indices = @transform_5, window_bounds = array<i64: 128, 128>}, {pipeline_mode = #tpu.pipeline_mode<synchronous>, transform_indices = @transform_6, window_bounds = array<i64: 1, 128>}, {transform_indices = @transform_7, window_bounds = array<i64: 16, 128>}]} {
    %c0 = arith.constant 0 : index
    %c0_0 = arith.constant 0 : index
    %0 = vector.load %arg1[%c0, %c0_0] : memref<16x128xbf16, #tpu.memory_space<vmem>>, vector<16x128xbf16>
    %c0_1 = arith.constant 0 : index
    %c0_2 = arith.constant 0 : index
    %1 = vector.load %arg2[%c0_1, %c0_2] : memref<128x128xbf16, #tpu.memory_space<vmem>>, vector<128x128xbf16>
    %cst = arith.constant dense<0.000000e+00> : vector<16x128xf32>
    %2 = tpu.matmul %0, %1, %cst {dimension_numbers = #tpu.dot_dimension_numbers<[1], [0], [0], [1], [0, 0, 1, 1], [], []>} : vector<16x128xbf16>, vector<128x128xbf16>, vector<16x128xf32> -> vector<16x128xf32>
    %c0_3 = arith.constant 0 : index
    %c0_4 = arith.constant 0 : index
    %3 = vector.load %arg3[%c0_3, %c0_4] : memref<1x128xf32, #tpu.memory_space<vmem>>, vector<1x128xf32>
    %4 = vector.broadcast %3 : vector<1x128xf32> to vector<16x128xf32>
    %5 = arith.addf %2, %4 : vector<16x128xf32>
    %cst_5 = arith.constant 0.000000e+00 : f32
    %6 = vector.broadcast %cst_5 : f32 to vector<16x128xf32>
    %7 = arith.maximumf %5, %6 : vector<16x128xf32>
    %8 = arith.truncf %7 : vector<16x128xf32> to vector<16x128xbf16>
    %c0_6 = arith.constant 0 : index
    %c0_7 = arith.constant 0 : index
    %9 = vector.load %arg4[%c0_6, %c0_7] : memref<128x128xbf16, #tpu.memory_space<vmem>>, vector<128x128xbf16>
    %cst_8 = arith.constant dense<0.000000e+00> : vector<16x128xf32>
    %10 = tpu.matmul %8, %9, %cst_8 {dimension_numbers = #tpu.dot_dimension_numbers<[1], [0], [0], [1], [0, 0, 1, 1], [], []>} : vector<16x128xbf16>, vector<128x128xbf16>, vector<16x128xf32> -> vector<16x128xf32>
    %c0_9 = arith.constant 0 : index
    %c0_10 = arith.constant 0 : index
    %11 = vector.load %arg5[%c0_9, %c0_10] : memref<1x128xf32, #tpu.memory_space<vmem>>, vector<1x128xf32>
    %12 = vector.broadcast %11 : vector<1x128xf32> to vector<16x128xf32>
    %13 = arith.addf %10, %12 : vector<16x128xf32>
    %cst_11 = arith.constant 0.000000e+00 : f32
    %14 = vector.broadcast %cst_11 : f32 to vector<16x128xf32>
    %15 = arith.maximumf %13, %14 : vector<16x128xf32>
    %16 = arith.truncf %15 : vector<16x128xf32> to vector<16x128xbf16>
    %c0_12 = arith.constant 0 : index
    %c0_13 = arith.constant 0 : index
    %17 = vector.load %arg6[%c0_12, %c0_13] : memref<128x128xbf16, #tpu.memory_space<vmem>>, vector<128x128xbf16>
    %cst_14 = arith.constant dense<0.000000e+00> : vector<16x128xf32>
    %18 = tpu.matmul %16, %17, %cst_14 {dimension_numbers = #tpu.dot_dimension_numbers<[1], [0], [0], [1], [0, 0, 1, 1], [], []>} : vector<16x128xbf16>, vector<128x128xbf16>, vector<16x128xf32> -> vector<16x128xf32>
    %c0_15 = arith.constant 0 : index
    %c0_16 = arith.constant 0 : index
    %19 = vector.load %arg7[%c0_15, %c0_16] : memref<1x128xf32, #tpu.memory_space<vmem>>, vector<1x128xf32>
    %20 = vector.broadcast %19 : vector<1x128xf32> to vector<16x128xf32>
    %21 = arith.addf %18, %20 : vector<16x128xf32>
    %c0_17 = arith.constant 0 : index
    %c0_18 = arith.constant 0 : index
    %22 = vector.load %arg8[%c0_17, %c0_18] : memref<16x128xf32, #tpu.memory_space<vmem>>, vector<16x128xf32>
    tpu.vector_store %arg8[%c0_17, %c0_18], %21 {strides = array<i32>} : memref<16x128xf32, #tpu.memory_space<vmem>>, vector<16x128xf32>,
    return
  }
  func.func @transform_0(%arg0: i32) -> (i32, i32) {
    %c0_i32 = arith.constant 0 : i32
    %c0_i32_0 = arith.constant 0 : i32
    return %arg0, %c0_i32 : i32, i32
  }
  func.func @transform_1(%arg0: i32) -> (i32, i32) {
    %c0_i32 = arith.constant 0 : i32
    %c0_i32_0 = arith.constant 0 : i32
    %c0_i32_1 = arith.constant 0 : i32
    return %c0_i32, %c0_i32_0 : i32, i32
  }
  func.func @transform_2(%arg0: i32) -> (i32, i32) {
    %c0_i32 = arith.constant 0 : i32
    %c0_i32_0 = arith.constant 0 : i32
    %c0_i32_1 = arith.constant 0 : i32
    return %c0_i32, %c0_i32_0 : i32, i32
  }
  func.func @transform_3(%arg0: i32) -> (i32, i32) {
    %c0_i32 = arith.constant 0 : i32
    %c0_i32_0 = arith.constant 0 : i32
    %c0_i32_1 = arith.constant 0 : i32
    return %c0_i32, %c0_i32_0 : i32, i32
  }
  func.func @transform_4(%arg0: i32) -> (i32, i32) {
    %c0_i32 = arith.constant 0 : i32
    %c0_i32_0 = arith.constant 0 : i32
    %c0_i32_1 = arith.constant 0 : i32
    return %c0_i32, %c0_i32_0 : i32, i32
  }
  func.func @transform_5(%arg0: i32) -> (i32, i32) {
    %c0_i32 = arith.constant 0 : i32
    %c0_i32_0 = arith.constant 0 : i32
    %c0_i32_1 = arith.constant 0 : i32
    return %c0_i32, %c0_i32_0 : i32, i32
  }
  func.func @transform_6(%arg0: i32) -> (i32, i32) {
    %c0_i32 = arith.constant 0 : i32
    %c0_i32_0 = arith.constant 0 : i32
    %c0_i32_1 = arith.constant 0 : i32
    return %c0_i32, %c0_i32_0 : i32, i32
  }
  func.func @transform_7(%arg0: i32) -> (i32, i32) {
    %c0_i32 = arith.constant 0 : i32
    %c0_i32_0 = arith.constant 0 : i32
    return %arg0, %c0_i32 : i32, i32
  }
}

module attributes {stable_mosaic.version = 11 : i64} {
  func.func @_mlp_kernel_resident(%arg0: i32, %arg1: memref<16x128xbf16, #tpu.memory_space<vmem>>, %arg2: memref<128x128xbf16, #tpu.memory_space<vmem>>, %arg3: memref<1x128xf32, #tpu.memory_space<vmem>>, %arg4: memref<128x128xbf16, #tpu.memory_space<vmem>>, %arg5: memref<1x128xf32, #tpu.memory_space<vmem>>, %arg6: memref<128x128xbf16, #tpu.memory_space<vmem>>, %arg7: memref<1x128xf32, #tpu.memory_space<vmem>>, %arg8: memref<16x128xf32, #tpu.memory_space<vmem>>) attributes {dimension_semantics = [#tpu.dimension_semantics<parallel>], iteration_bounds = array<i64: 1>, scalar_prefetch = 0 : i64, scratch_operands = 0 : i64, tpu.core_type = #tpu.core_type<tc>, window_params = [{transform_indices = @transform_0, window_bounds = array<i64: 16, 128>}, {pipeline_mode = #tpu.pipeline_mode<synchronous>, transform_indices = @transform_1, window_bounds = array<i64: 128, 128>}, {pipeline_mode = #tpu.pipeline_mode<synchronous>, transform_indices = @transform_2, window_bounds = array<i64: 1, 128>}, {pipeline_mode = #tpu.pipeline_mode<synchronous>, transform_indices = @transform_3, window_bounds = array<i64: 128, 128>}, {pipeline_mode = #tpu.pipeline_mode<synchronous>, transform_indices = @transform_4, window_bounds = array<i64: 1, 128>}, {pipeline_mode = #tpu.pipeline_mode<synchronous>, transform_indices = @transform_5, window_bounds = array<i64: 128, 128>}, {pipeline_mode = #tpu.pipeline_mode<synchronous>, transform_indices = @transform_6, window_bounds = array<i64: 1, 128>}, {transform_indices = @transform_7, window_bounds = array<i64: 16, 128>}]} {
    %c0 = arith.constant 0 : index
    %c0_0 = arith.constant 0 : index
    %0 = vector.load %arg1[%c0, %c0_0] : memref<16x128xbf16, #tpu.memory_space<vmem>>, vector<16x128xbf16>
    %c0_1 = arith.constant 0 : index
    %c0_2 = arith.constant 0 : index
    %1 = vector.load %arg2[%c0_1, %c0_2] : memref<128x128xbf16, #tpu.memory_space<vmem>>, vector<128x128xbf16>
    %cst = arith.constant dense<0.000000e+00> : vector<16x128xf32>
    %2 = tpu.matmul %0, %1, %cst {dimension_numbers = #tpu.dot_dimension_numbers<[1], [0], [0], [1], [0, 0, 1, 1], [], []>} : vector<16x128xbf16>, vector<128x128xbf16>, vector<16x128xf32> -> vector<16x128xf32>
    %c0_3 = arith.constant 0 : index
    %c0_4 = arith.constant 0 : index
    %3 = vector.load %arg3[%c0_3, %c0_4] : memref<1x128xf32, #tpu.memory_space<vmem>>, vector<1x128xf32>
    %4 = vector.broadcast %3 : vector<1x128xf32> to vector<16x128xf32>
    %5 = arith.addf %2, %4 : vector<16x128xf32>
    %cst_5 = arith.constant 0.000000e+00 : f32
    %6 = vector.broadcast %cst_5 : f32 to vector<16x128xf32>
    %7 = arith.maximumf %5, %6 : vector<16x128xf32>
    %8 = arith.truncf %7 : vector<16x128xf32> to vector<16x128xbf16>
    %c0_6 = arith.constant 0 : index
    %c0_7 = arith.constant 0 : index
    %9 = vector.load %arg4[%c0_6, %c0_7] : memref<128x128xbf16, #tpu.memory_space<vmem>>, vector<128x128xbf16>
    %cst_8 = arith.constant dense<0.000000e+00> : vector<16x128xf32>
    %10 = tpu.matmul %8, %9, %cst_8 {dimension_numbers = #tpu.dot_dimension_numbers<[1], [0], [0], [1], [0, 0, 1, 1], [], []>} : vector<16x128xbf16>, vector<128x128xbf16>, vector<16x128xf32> -> vector<16x128xf32>
    %c0_9 = arith.constant 0 : index
    %c0_10 = arith.constant 0 : index
    %11 = vector.load %arg5[%c0_9, %c0_10] : memref<1x128xf32, #tpu.memory_space<vmem>>, vector<1x128xf32>
    %12 = vector.broadcast %11 : vector<1x128xf32> to vector<16x128xf32>
    %13 = arith.addf %10, %12 : vector<16x128xf32>
    %cst_11 = arith.constant 0.000000e+00 : f32
    %14 = vector.broadcast %cst_11 : f32 to vector<16x128xf32>
    %15 = arith.maximumf %13, %14 : vector<16x128xf32>
    %16 = arith.truncf %15 : vector<16x128xf32> to vector<16x128xbf16>
    %c0_12 = arith.constant 0 : index
    %c0_13 = arith.constant 0 : index
    %17 = vector.load %arg6[%c0_12, %c0_13] : memref<128x128xbf16, #tpu.memory_space<vmem>>, vector<128x128xbf16>
    %cst_14 = arith.constant dense<0.000000e+00> : vector<16x128xf32>
    %18 = tpu.matmul %16, %17, %cst_14 {dimension_numbers = #tpu.dot_dimension_numbers<[1], [0], [0], [1], [0, 0, 1, 1], [], []>} : vector<16x128xbf16>, vector<128x128xbf16>, vector<16x128xf32> -> vector<16x128xf32>
    %c0_15 = arith.constant 0 : index
    %c0_16 = arith.constant 0 : index
    %19 = vector.load %arg7[%c0_15, %c0_16] : memref<1x128xf32, #tpu.memory_space<vmem>>, vector<1x128xf32>
    %20 = vector.broadcast %19 : vector<1x128xf32> to vector<16x128xf32>
    %21 = arith.addf %18, %20 : vector<16x128xf32>
    %c0_17 = arith.constant 0 : index
    %c0_18 = arith.constant 0 : index
    %22 = vector.load %arg8[%c0_17, %c0_18] : memref<16x128xf32, #tpu.memory_space<vmem>>, vector<16x128xf32>
    tpu.vector_store %arg8[%c0_17, %c0_18], %21 {strides = array<i32>} : memref<16x128xf32, #tpu.memory_space<vmem>>, vector<16x128xf32>,
    return
  }
  func.func @transform_0(%arg0: i32) -> (i32, i32) {
    %c0_i32 = arith.constant 0 : i32
    %c0_i32_0 = arith.constant 0 : i32
    return %arg0, %c0_i32 : i32, i32
  }
  func.func @transform_1(%arg0: i32) -> (i32, i32) {
    %c0_i32 = arith.constant 0 : i32
    %c0_i32_0 = arith.constant 0 : i32
    %c0_i32_1 = arith.constant 0 : i32
    return %c0_i32, %c0_i32_0 : i32, i32
  }
  func.func @transform_2(%arg0: i32) -> (i32, i32) {
    %c0_i32 = arith.constant 0 : i32
    %c0_i32_0 = arith.constant 0 : i32
    %c0_i32_1 = arith.constant 0 : i32
    return %c0_i32, %c0_i32_0 : i32, i32
  }
  func.func @transform_3(%arg0: i32) -> (i32, i32) {
    %c0_i32 = arith.constant 0 : i32
    %c0_i32_0 = arith.constant 0 : i32
    %c0_i32_1 = arith.constant 0 : i32
    return %c0_i32, %c0_i32_0 : i32, i32
  }
  func.func @transform_4(%arg0: i32) -> (i32, i32) {
    %c0_i32 = arith.constant 0 : i32
    %c0_i32_0 = arith.constant 0 : i32
    %c0_i32_1 = arith.constant 0 : i32
    return %c0_i32, %c0_i32_0 : i32, i32
  }
  func.func @transform_5(%arg0: i32) -> (i32, i32) {
    %c0_i32 = arith.constant 0 : i32
    %c0_i32_0 = arith.constant 0 : i32
    %c0_i32_1 = arith.constant 0 : i32
    return %c0_i32, %c0_i32_0 : i32, i32
  }
  func.func @transform_6(%arg0: i32) -> (i32, i32) {
    %c0_i32 = arith.constant 0 : i32
    %c0_i32_0 = arith.constant 0 : i32
    %c0_i32_1 = arith.constant 0 : i32
    return %c0_i32, %c0_i32_0 : i32, i32
  }
  func.func @transform_7(%arg0: i32) -> (i32, i32) {
    %c0_i32 = arith.constant 0 : i32
    %c0_i32_0 = arith.constant 0 : i32
    return %arg0, %c0_i32 : i32, i32
  }
}

</mosaic_0001>

<bundles_post_ra>
// kernel: tpu_custom_call.1
= control target key start
LH: loop header
LB: loop body
LE: loop exit
PB: predicated region body
PF: predicated region fallthrough
CT: control target
= control target key end

     0   :  { %12 = vsyncpa [#allocation3], 0  ;;  %s830_s0 = inlined_call_operand.hbm [shape: bf16[16,128], index: 0, kind: input, shape index: {}]   ;;  %s831_s1 = inlined_call_operand.hbm [shape: bf16[128,128], index: 1, kind: input, shape index: {}]   ;;  %s832_s2 = inlined_call_operand.vmem [shape: f32[1,128], index: 2, kind: input, shape index: {}]   ;;  %s833_s3 = inlined_call_operand.hbm [shape: bf16[128,128], index: 3, kind: input, shape index: {}]   ;;  %s834_s4 = inlined_call_operand.vmem [shape: f32[1,128], index: 4, kind: input, shape index: {}]   ;;  %s835_s5 = inlined_call_operand.hbm [shape: bf16[128,128], index: 5, kind: input, shape index: {}]   ;;  %s836_s6 = inlined_call_operand.vmem [shape: f32[1,128], index: 6, kind: input, shape index: {}]   ;;  %s837_s7 = inlined_call_operand.hbm [shape: f32[16,128], index: 7, kind: output, shape index: {}]  }
   0x1   :  { %13 = vsyncpa [#allocation6], 0 }
   0x2   :  { %14 = vsyncpa [#allocation9], 0 }
   0x3   :  { %15 = vsyncpa [#allocation4], 0  ;;  %s713_s24 = smov [#allocation5]   ;;  %s714_s26 = smov [#allocation2]  }
   0x4   :  { %s33_s25 = sshll.u32 %s713_s24, 4  ;;  %s21_s27 = sshll.u32 %s714_s26, 4  ;;  %s34_s25 = int_to_ptr.vmem [resolvable:$true] %s33_s25  ;;  %s22_s27 = int_to_ptr.vmem [resolvable:$true] %s21_s27 }
   0x5   :  { %s613_s28 = scalar_lea.vmem %s34_s25, 1024  ;;  %p618_p1 = scmp.lt.s32.totalorder %s34_s25, %s34_s25 }
   0x6   :  { %p614_p0 = scmp.ne.s32.totalorder %s34_s25, %s613_s28  ;;  %p619_p2 = scmp.lt.s32.totalorder %s613_s28, %s613_s28 }
   0x8   :  { %p620_p3 = por %p619_p2, %p618_p1 }
   0xa   :  { %p621_p4 = pnand %p620_p3, %p614_p0 }
   0xc   :  { %624 = shalt.err (!%p621_p4)
}
   0xd   :  { %s715_s29 = smov 64   ;;  %s716_s30 = smov 4  }
   0xe   :  { %39 = dma.hbm_to_vmem [thread:$0]  %s831_s1, 1024, %s34_s25, [#allocation6], %s715_s29, %s715_s29, %s716_s30  }
   0xf   :  { %s633_s10 = scalar_lea.vmem %s22_s27, 128  ;;  %p638_p6 = scmp.lt.s32.totalorder %s22_s27, %s22_s27 }
  0x10   :  { %p634_p5 = scmp.ne.s32.totalorder %s22_s27, %s633_s10  ;;  %p639_p7 = scmp.lt.s32.totalorder %s633_s10, %s633_s10 }
  0x12   :  { %p640_p8 = por %p639_p7, %p638_p6 }
  0x14   :  { %p641_p9 = pnand %p640_p8, %p634_p5 }
  0x16   :  { %644 = shalt.err (!%p641_p9)
}
  0x17   :  { %27 = dma.hbm_to_vmem [thread:$0]  %s830_s0, 128, %s22_s27, [#allocation3], %s715_s29, %s715_s29, %s716_s30  }
  0x18   :  { %s717_s13 = smov [#allocation7]   ;;  %s718_s15 = smov [#allocation8]  }
  0x19   :  { %s47_s14 = sshll.u32 %s717_s13, 4  ;;  %s61_s16 = sshll.u32 %s718_s15, 4  ;;  %s48_s14 = int_to_ptr.vmem [resolvable:$true] %s47_s14  ;;  %s62_s16 = int_to_ptr.vmem [resolvable:$true] %s61_s16 }
  0x1a   :  { %s653_s1 = scalar_lea.vmem %s48_s14, 1024  ;;  %p658_p11 = scmp.lt.s32.totalorder %s48_s14, %s48_s14 }
  0x1b   :  { %p654_p10 = scmp.ne.s32.totalorder %s48_s14, %s653_s1  ;;  %p659_p12 = scmp.lt.s32.totalorder %s653_s1, %s653_s1 }
  0x1d   :  { %p660_p13 = por %p659_p12, %p658_p11 }
  0x1f   :  { %p661_p0 = pnand %p660_p13, %p654_p10 }
  0x21   :  { %664 = shalt.err (!%p661_p0)
}
  0x22   :  { %53 = dma.hbm_to_vmem [thread:$0]  %s833_s3, 1024, %s48_s14, [#allocation6], %s715_s29, %s715_s29, %s716_s30  }
  0x23   :  { %s673_s0 = scalar_lea.vmem %s62_s16, 1024  ;;  %p678_p2 = scmp.lt.s32.totalorder %s62_s16, %s62_s16 }
  0x24   :  { %p674_p1 = scmp.ne.s32.totalorder %s62_s16, %s673_s0  ;;  %p679_p3 = scmp.lt.s32.totalorder %s673_s0, %s673_s0 }
  0x26   :  { %p680_p4 = por %p679_p3, %p678_p2 }
  0x28   :  { %p681_p5 = pnand %p680_p4, %p674_p1 }
  0x2a   :  { %684 = shalt.err (!%p681_p5)
}
  0x2b   :  { %67 = dma.hbm_to_vmem [thread:$0]  %s835_s5, 1024, %s62_s16, [#allocation9], %s715_s29, %s715_s29, %s716_s30  }
  0x2c   :  { %705 = dma.done.wait [#allocation3], 128  }
  0x2d   :  { %706 = vsyncadd [#allocation3], 4294967168 }
  0x2e   :  { %707 = dma.done.wait [#allocation6], 2048  }
  0x2f   :  { %708 = vsyncadd [#allocation6], 4294965248 }
  0x30   :  { %709 = dma.done.wait [#allocation9], 1024  }
  0x31   :  { %710 = vsyncadd [#allocation9], 4294966272  ;;  %v719_v0 = vmov 0.0   ;;  %vm720_vm0 = vmmov 0   ;;  %v580_v1 = vld [vmem:[#allocation5 + $0x38] sm:$0xff]   ;;  %v581_v2 = vld [vmem:[#allocation5 + $0x30] sm:$0xff]  }
  0x32   :  { %509 = vmatprep.subr.bf16.mxu0 %v719_v0  ;;  %525 = vmatprep.mubr.msk.bf16.mxu0 %vm720_vm0, %v719_v0  ;;  %v582_v3 = vld [vmem:[#allocation5 + $0x28] sm:$0xff]   ;;  %v589_v4 = vld [vmem:[#allocation7 + $0x38] sm:$0xff]   ;;  %v583_v5 = vld [vmem:[#allocation5 + $0x20] sm:$0xff]   ;;  %s721_s24 = smov [#allocation10]  }
  0x33   :  { %529 = vmatprep.subr.bf16.mxu1 %v719_v0  ;;  %545 = vmatprep.mubr.msk.bf16.mxu1 %vm720_vm0, %v719_v0  ;;  %v590_v6 = vld [vmem:[#allocation7 + $0x30] sm:$0xff]   ;;  %v584_v7 = vld [vmem:[#allocation5 + $0x18] sm:$0xff]   ;;  %v591_v8 = vld [vmem:[#allocation7 + $0x28] sm:$0xff]   ;;  %s440_s25 = sshll.u32 %s721_s24, 4  ;;  %s441_s25 = int_to_ptr.vmem [resolvable:$true] %s440_s25 }
  0x34   :  { %510 = vmatpush3.bf16.msra.mxu0 %v580_v1  ;;  %530 = vmatpush3.bf16.msra.mxu1 %v589_v4  ;;  %v585_v9 = vld [vmem:[#allocation5 + $0x10] sm:$0xff]   ;;  %v592_v10 = vld [vmem:[#allocation7 + $0x20] sm:$0xff]   ;;  %v586_v11 = vld [vmem:[#allocation5 + $0x8] sm:$0xff]   ;;  %p690_p7 = scmp.lt.s32.totalorder %s441_s25, %s441_s25 }
  0x35   :  { %511 = vmatprep.subr.bf16.mxu0 %v719_v0  ;;  %531 = vmatprep.subr.bf16.mxu1 %v719_v0  ;;  %v593_v12 = vld [vmem:[#allocation7 + $0x18] sm:$0xff]   ;;  %v587_v13 = vld [vmem:[#allocation5] sm:$0xff]   ;;  %v594_v15 = vld [vmem:[#allocation7 + $0x10] sm:$0xff]  }
  0x36   :  { %v588_v14 = vld [vmem:[#allocation2] sm:$0xff]   ;;  %v595_v16 = vld [vmem:[#allocation7 + $0x8] sm:$0xff]   ;;  %v596_v17 = vld [vmem:[#allocation7] sm:$0xff]  }
  0x37   :  { %v597_v18 = vld [vmem:[#allocation8 + $0x38] sm:$0xff]   ;;  %v598_v19 = vld [vmem:[#allocation8 + $0x30] sm:$0xff]   ;;  %v599_v20 = vld [vmem:[#allocation8 + $0x28] sm:$0xff]  }
  0x38   :  { %512 = vmatpush3.bf16.msra.mxu0 %v581_v2  ;;  %532 = vmatpush3.bf16.msra.mxu1 %v590_v6  ;;  %v600_v21 = vld [vmem:[#allocation8 + $0x20] sm:$0xff]   ;;  %v601_v22 = vld [vmem:[#allocation8 + $0x18] sm:$0xff]   ;;  %v602_v33 = vld [vmem:[#allocation8 + $0x10] sm:$0xff]  }
  0x39   :  { %513 = vmatprep.subr.bf16.mxu0 %v719_v0  ;;  %533 = vmatprep.subr.bf16.mxu1 %v719_v0  ;;  %v454_v23 = vld [vmem:[%s832_s2] ss:$0 sm:$0xff]  ;;  %v603_v34 = vld [vmem:[#allocation8 + $0x8] sm:$0xff]   ;;  %v604_v35 = vld [vmem:[#allocation8] sm:$0xff]  }
  0x3a   :  { %v464_v36 = vld [vmem:[%s834_s4] ss:$0 sm:$0xff]  ;;  %s685_s4 = scalar_lea.vmem %s441_s25, 256 }
  0x3b   :  { %v473_v46 = vld [vmem:[%s836_s6] ss:$0 sm:$0xff]  ;;  %p686_p6 = scmp.ne.s32.totalorder %s441_s25, %s685_s4  ;;  %p691_p8 = scmp.lt.s32.totalorder %s685_s4, %s685_s4 }
  0x3c   :  { %514 = vmatpush3.bf16.msra.mxu0 %v582_v3  ;;  %534 = vmatpush3.bf16.msra.mxu1 %v591_v8 }
  0x3d   :  { %515 = vmatprep.subr.bf16.mxu0 %v719_v0  ;;  %535 = vmatprep.subr.bf16.mxu1 %v719_v0  ;;  %p692_p9 = por %p691_p8, %p690_p7 }
  0x3f   :  { %p693_p10 = pnand %p692_p9, %p686_p6 }
  0x40   :  { %516 = vmatpush3.bf16.msra.mxu0 %v583_v5  ;;  %536 = vmatpush3.bf16.msra.mxu1 %v592_v10 }
  0x41   :  { %517 = vmatprep.subr.bf16.mxu0 %v719_v0  ;;  %537 = vmatprep.subr.bf16.mxu1 %v719_v0 }
  0x44   :  { %518 = vmatpush3.bf16.msra.mxu0 %v584_v7  ;;  %538 = vmatpush3.bf16.msra.mxu1 %v593_v12 }
  0x45   :  { %519 = vmatprep.subr.bf16.mxu0 %v719_v0  ;;  %539 = vmatprep.subr.bf16.mxu1 %v719_v0 }
  0x48   :  { %520 = vmatpush3.bf16.msra.mxu0 %v585_v9  ;;  %540 = vmatpush3.bf16.msra.mxu1 %v594_v15 }
  0x49   :  { %521 = vmatprep.subr.bf16.mxu0 %v719_v0  ;;  %541 = vmatprep.subr.bf16.mxu1 %v719_v0 }
  0x4c   :  { %522 = vmatpush3.bf16.msra.mxu0 %v586_v11  ;;  %542 = vmatpush3.bf16.msra.mxu1 %v595_v16 }
  0x4d   :  { %523 = vmatprep.subr.bf16.mxu0 %v719_v0  ;;  %543 = vmatprep.subr.bf16.mxu1 %v719_v0 }
  0x50   :  { %524 = vmatpush3.bf16.msra.mxu0 %v587_v13  ;;  %544 = vmatpush3.bf16.msra.mxu1 %v596_v17 }
  0x51   :  { %549 = vmatprep.subr.bf16.mxu0 %v719_v0 }
  0x53   :  { %526 = vmatmul.mubr.bf16.vlgmr.msra.gmra.mxu0 %v588_v14 }
  0x54   :  { %565 = vmatprep.mubr.msk.bf16.mxu0 %vm720_vm0, %v719_v0  ;;  %550 = vmatpush3.bf16.msra.mxu0 %v597_v18 }
  0x55   :  { %551 = vmatprep.subr.bf16.mxu0 %v719_v0 }
  0x58   :  { %552 = vmatpush3.bf16.msra.mxu0 %v598_v19 }
  0x59   :  { %553 = vmatprep.subr.bf16.mxu0 %v719_v0 }
  0x5c   :  { %554 = vmatpush3.bf16.msra.mxu0 %v599_v20 }
  0x5d   :  { %555 = vmatprep.subr.bf16.mxu0 %v719_v0 }
  0x60   :  { %556 = vmatpush3.bf16.msra.mxu0 %v600_v21 }
  0x61   :  { %557 = vmatprep.subr.bf16.mxu0 %v719_v0 }
  0x64   :  { %558 = vmatpush3.bf16.msra.mxu0 %v601_v22 }
  0x65   :  { %559 = vmatprep.subr.bf16.mxu0 %v719_v0 }
  0x68   :  { %560 = vmatpush3.bf16.msra.mxu0 %v602_v33 }
  0x69   :  { %561 = vmatprep.subr.bf16.mxu0 %v719_v0 }
  0x6c   :  { %562 = vmatpush3.bf16.msra.mxu0 %v603_v34 }
  0x6d   :  { %563 = vmatprep.subr.bf16.mxu0 %v719_v0 }
  0x70   :  { %564 = vmatpush3.bf16.msra.mxu0 %v604_v35 }
 0x113   :  { %v196_v24 = vpop.f32.mrf.mxu0 }
 0x114   :  { %v197_v26 = vadd.f32 %v454_v23, %v196_v24 }
 0x115   :  { %v527_v25 = vpop.f32.mrf.mxu0 }
 0x116   :  { %v203_v30 = vmax.f32 %v197_v26, 0.0 }
 0x117   :  { %v199_v27 = vpop.f32.mrf.mxu0 }
 0x118   :  { %v200_v28 = vadd.f32 %v454_v23, %v199_v27 }
 0x119   :  { %v528_v29 = vpop.f32.mrf.mxu0 }
 0x11a   :  { %v204_v31 = vmax.f32 %v200_v28, 0.0 }
 0x11c   :  { %v205_v32 = vpack.c.bf16 %v204_v31, %v203_v30 }
 0x11e   :  { %546 = vmatmul.mubr.bf16.vlgmr.msra.gmra.mxu1 %v205_v32 }
 0x1de   :  { %v311_v37 = vpop.f32.mrf.mxu1 }
 0x1df   :  { %v312_v39 = vadd.f32 %v464_v36, %v311_v37 }
 0x1e0   :  { %v547_v38 = vpop.f32.mrf.mxu1 }
 0x1e1   :  { %v318_v43 = vmax.f32 %v312_v39, 0.0 }
 0x1e2   :  { %v314_v40 = vpop.f32.mrf.mxu1 }
 0x1e3   :  { %v315_v41 = vadd.f32 %v464_v36, %v314_v40 }
 0x1e4   :  { %v548_v42 = vpop.f32.mrf.mxu1 }
 0x1e5   :  { %v319_v44 = vmax.f32 %v315_v41, 0.0 }
 0x1e7   :  { %v320_v45 = vpack.c.bf16 %v319_v44, %v318_v43 }
 0x1e9   :  { %566 = vmatmul.mubr.bf16.vlgmr.msra.gmra.mxu0 %v320_v45 }
 0x2a9   :  { %v426_v47 = vpop.f32.mrf.mxu0 }
 0x2aa   :  { %v427_v48 = vadd.f32 %v473_v46, %v426_v47 }
 0x2ab   :  { %v567_v49 = vpop.f32.mrf.mxu0 }
 0x2ac   :  { %433 = vst [vmem:[#allocation10] sm:$0xff] %v427_v48 }
 0x2ad   :  { %v429_v50 = vpop.f32.mrf.mxu0 }
 0x2ae   :  { %v430_v51 = vadd.f32 %v473_v46, %v429_v50 }
 0x2af   :  { %v568_v52 = vpop.f32.mrf.mxu0 }
 0x2b0   :  { %434 = vst [vmem:[#allocation10 + $0x8] sm:$0xff] %v430_v51 }
 0x2b1   :  { %696 = shalt.err (!%p693_p10)
}
 0x2b2   :  { %s722_s26 = smov 128   ;;  %s723_s6 = smov 8  }
 0x2b3   :  { %446 = dma.vmem_to_hbm [thread:$0]  %s441_s25, 256, %s837_s7, [#allocation4], %s722_s26, %s722_s26, %s723_s6  }
 0x2b4   :  { %711 = dma.done.wait [#allocation4], 256  }
 0x2b5   :  { %712 = vsyncadd [#allocation4], 4294967040 }
 0x2b6   :  { %450 = vsyncpa [#allocation3], 1 }
 0x2b7   :  { %451 = vsyncpa [#allocation6], 1 }
 0x2b8   :  { %452 = vsyncpa [#allocation9], 1 }
 0x2b9   :  { %453 = vsyncpa [#allocation4], 1 }

// kernel: tpu_custom_call.1
= control target key start
LH: loop header
LB: loop body
LE: loop exit
PB: predicated region body
PF: predicated region fallthrough
CT: control target
= control target key end

     0   :  { %12 = vsyncpa [#allocation3], 0  ;;  %s830_s0 = inlined_call_operand.hbm [shape: bf16[16,128], index: 0, kind: input, shape index: {}]   ;;  %s831_s1 = inlined_call_operand.hbm [shape: bf16[128,128], index: 1, kind: input, shape index: {}]   ;;  %s832_s2 = inlined_call_operand.vmem [shape: f32[1,128], index: 2, kind: input, shape index: {}]   ;;  %s833_s3 = inlined_call_operand.hbm [shape: bf16[128,128], index: 3, kind: input, shape index: {}]   ;;  %s834_s4 = inlined_call_operand.vmem [shape: f32[1,128], index: 4, kind: input, shape index: {}]   ;;  %s835_s5 = inlined_call_operand.hbm [shape: bf16[128,128], index: 5, kind: input, shape index: {}]   ;;  %s836_s6 = inlined_call_operand.vmem [shape: f32[1,128], index: 6, kind: input, shape index: {}]   ;;  %s837_s7 = inlined_call_operand.hbm [shape: f32[16,128], index: 7, kind: output, shape index: {}]  }
   0x1   :  { %13 = vsyncpa [#allocation6], 0 }
   0x2   :  { %14 = vsyncpa [#allocation9], 0 }
   0x3   :  { %15 = vsyncpa [#allocation4], 0  ;;  %s713_s24 = smov [#allocation5]   ;;  %s714_s26 = smov [#allocation2]  }
   0x4   :  { %s33_s25 = sshll.u32 %s713_s24, 4  ;;  %s21_s27 = sshll.u32 %s714_s26, 4  ;;  %s34_s25 = int_to_ptr.vmem [resolvable:$true] %s33_s25  ;;  %s22_s27 = int_to_ptr.vmem [resolvable:$true] %s21_s27 }
   0x5   :  { %s613_s28 = scalar_lea.vmem %s34_s25, 1024  ;;  %p618_p1 = scmp.lt.s32.totalorder %s34_s25, %s34_s25 }
   0x6   :  { %p614_p0 = scmp.ne.s32.totalorder %s34_s25, %s613_s28  ;;  %p619_p2 = scmp.lt.s32.totalorder %s613_s28, %s613_s28 }
   0x8   :  { %p620_p3 = por %p619_p2, %p618_p1 }
   0xa   :  { %p621_p4 = pnand %p620_p3, %p614_p0 }
   0xc   :  { %624 = shalt.err (!%p621_p4)
}
   0xd   :  { %s715_s29 = smov 64   ;;  %s716_s30 = smov 4  }
   0xe   :  { %39 = dma.hbm_to_vmem [thread:$0]  %s831_s1, 1024, %s34_s25, [#allocation6], %s715_s29, %s715_s29, %s716_s30  }
   0xf   :  { %s633_s10 = scalar_lea.vmem %s22_s27, 128  ;;  %p638_p6 = scmp.lt.s32.totalorder %s22_s27, %s22_s27 }
  0x10   :  { %p634_p5 = scmp.ne.s32.totalorder %s22_s27, %s633_s10  ;;  %p639_p7 = scmp.lt.s32.totalorder %s633_s10, %s633_s10 }
  0x12   :  { %p640_p8 = por %p639_p7, %p638_p6 }
  0x14   :  { %p641_p9 = pnand %p640_p8, %p634_p5 }
  0x16   :  { %644 = shalt.err (!%p641_p9)
}
  0x17   :  { %27 = dma.hbm_to_vmem [thread:$0]  %s830_s0, 128, %s22_s27, [#allocation3], %s715_s29, %s715_s29, %s716_s30  }
  0x18   :  { %s717_s13 = smov [#allocation7]   ;;  %s718_s15 = smov [#allocation8]  }
  0x19   :  { %s47_s14 = sshll.u32 %s717_s13, 4  ;;  %s61_s16 = sshll.u32 %s718_s15, 4  ;;  %s48_s14 = int_to_ptr.vmem [resolvable:$true] %s47_s14  ;;  %s62_s16 = int_to_ptr.vmem [resolvable:$true] %s61_s16 }
  0x1a   :  { %s653_s1 = scalar_lea.vmem %s48_s14, 1024  ;;  %p658_p11 = scmp.lt.s32.totalorder %s48_s14, %s48_s14 }
  0x1b   :  { %p654_p10 = scmp.ne.s32.totalorder %s48_s14, %s653_s1  ;;  %p659_p12 = scmp.lt.s32.totalorder %s653_s1, %s653_s1 }
  0x1d   :  { %p660_p13 = por %p659_p12, %p658_p11 }
  0x1f   :  { %p661_p0 = pnand %p660_p13, %p654_p10 }
  0x21   :  { %664 = shalt.err (!%p661_p0)
}
  0x22   :  { %53 = dma.hbm_to_vmem [thread:$0]  %s833_s3, 1024, %s48_s14, [#allocation6], %s715_s29, %s715_s29, %s716_s30  }
  0x23   :  { %s673_s0 = scalar_lea.vmem %s62_s16, 1024  ;;  %p678_p2 = scmp.lt.s32.totalorder %s62_s16, %s62_s16 }
  0x24   :  { %p674_p1 = scmp.ne.s32.totalorder %s62_s16, %s673_s0  ;;  %p679_p3 = scmp.lt.s32.totalorder %s673_s0, %s673_s0 }
  0x26   :  { %p680_p4 = por %p679_p3, %p678_p2 }
  0x28   :  { %p681_p5 = pnand %p680_p4, %p674_p1 }
  0x2a   :  { %684 = shalt.err (!%p681_p5)
}
  0x2b   :  { %67 = dma.hbm_to_vmem [thread:$0]  %s835_s5, 1024, %s62_s16, [#allocation9], %s715_s29, %s715_s29, %s716_s30  }
  0x2c   :  { %705 = dma.done.wait [#allocation3], 128  }
  0x2d   :  { %706 = vsyncadd [#allocation3], 4294967168 }
  0x2e   :  { %707 = dma.done.wait [#allocation6], 2048  }
  0x2f   :  { %708 = vsyncadd [#allocation6], 4294965248 }
  0x30   :  { %709 = dma.done.wait [#allocation9], 1024  }
  0x31   :  { %710 = vsyncadd [#allocation9], 4294966272  ;;  %v719_v0 = vmov 0.0   ;;  %vm720_vm0 = vmmov 0   ;;  %v580_v1 = vld [vmem:[#allocation5 + $0x38] sm:$0xff]   ;;  %v581_v2 = vld [vmem:[#allocation5 + $0x30] sm:$0xff]  }
  0x32   :  { %509 = vmatprep.subr.bf16.mxu0 %v719_v0  ;;  %525 = vmatprep.mubr.msk.bf16.mxu0 %vm720_vm0, %v719_v0  ;;  %v582_v3 = vld [vmem:[#allocation5 + $0x28] sm:$0xff]   ;;  %v589_v4 = vld [vmem:[#allocation7 + $0x38] sm:$0xff]   ;;  %v583_v5 = vld [vmem:[#allocation5 + $0x20] sm:$0xff]   ;;  %s721_s24 = smov [#allocation10]  }
  0x33   :  { %529 = vmatprep.subr.bf16.mxu1 %v719_v0  ;;  %545 = vmatprep.mubr.msk.bf16.mxu1 %vm720_vm0, %v719_v0  ;;  %v590_v6 = vld [vmem:[#allocation7 + $0x30] sm:$0xff]   ;;  %v584_v7 = vld [vmem:[#allocation5 + $0x18] sm:$0xff]   ;;  %v591_v8 = vld [vmem:[#allocation7 + $0x28] sm:$0xff]   ;;  %s440_s25 = sshll.u32 %s721_s24, 4  ;;  %s441_s25 = int_to_ptr.vmem [resolvable:$true] %s440_s25 }
  0x34   :  { %510 = vmatpush3.bf16.msra.mxu0 %v580_v1  ;;  %530 = vmatpush3.bf16.msra.mxu1 %v589_v4  ;;  %v585_v9 = vld [vmem:[#allocation5 + $0x10] sm:$0xff]   ;;  %v592_v10 = vld [vmem:[#allocation7 + $0x20] sm:$0xff]   ;;  %v586_v11 = vld [vmem:[#allocation5 + $0x8] sm:$0xff]   ;;  %p690_p7 = scmp.lt.s32.totalorder %s441_s25, %s441_s25 }
  0x35   :  { %511 = vmatprep.subr.bf16.mxu0 %v719_v0  ;;  %531 = vmatprep.subr.bf16.mxu1 %v719_v0  ;;  %v593_v12 = vld [vmem:[#allocation7 + $0x18] sm:$0xff]   ;;  %v587_v13 = vld [vmem:[#allocation5] sm:$0xff]   ;;  %v594_v15 = vld [vmem:[#allocation7 + $0x10] sm:$0xff]  }
  0x36   :  { %v588_v14 = vld [vmem:[#allocation2] sm:$0xff]   ;;  %v595_v16 = vld [vmem:[#allocation7 + $0x8] sm:$0xff]   ;;  %v596_v17 = vld [vmem:[#allocation7] sm:$0xff]  }
  0x37   :  { %v597_v18 = vld [vmem:[#allocation8 + $0x38] sm:$0xff]   ;;  %v598_v19 = vld [vmem:[#allocation8 + $0x30] sm:$0xff]   ;;  %v599_v20 = vld [vmem:[#allocation8 + $0x28] sm:$0xff]  }
  0x38   :  { %512 = vmatpush3.bf16.msra.mxu0 %v581_v2  ;;  %532 = vmatpush3.bf16.msra.mxu1 %v590_v6  ;;  %v600_v21 = vld [vmem:[#allocation8 + $0x20] sm:$0xff]   ;;  %v601_v22 = vld [vmem:[#allocation8 + $0x18] sm:$0xff]   ;;  %v602_v33 = vld [vmem:[#allocation8 + $0x10] sm:$0xff]  }
  0x39   :  { %513 = vmatprep.subr.bf16.mxu0 %v719_v0  ;;  %533 = vmatprep.subr.bf16.mxu1 %v719_v0  ;;  %v454_v23 = vld [vmem:[%s832_s2] ss:$0 sm:$0xff]  ;;  %v603_v34 = vld [vmem:[#allocation8 + $0x8] sm:$0xff]   ;;  %v604_v35 = vld [vmem:[#allocation8] sm:$0xff]  }
  0x3a   :  { %v464_v36 = vld [vmem:[%s834_s4] ss:$0 sm:$0xff]  ;;  %s685_s4 = scalar_lea.vmem %s441_s25, 256 }
  0x3b   :  { %v473_v46 = vld [vmem:[%s836_s6] ss:$0 sm:$0xff]  ;;  %p686_p6 = scmp.ne.s32.totalorder %s441_s25, %s685_s4  ;;  %p691_p8 = scmp.lt.s32.totalorder %s685_s4, %s685_s4 }
  0x3c   :  { %514 = vmatpush3.bf16.msra.mxu0 %v582_v3  ;;  %534 = vmatpush3.bf16.msra.mxu1 %v591_v8 }
  0x3d   :  { %515 = vmatprep.subr.bf16.mxu0 %v719_v0  ;;  %535 = vmatprep.subr.bf16.mxu1 %v719_v0  ;;  %p692_p9 = por %p691_p8, %p690_p7 }
  0x3f   :  { %p693_p10 = pnand %p692_p9, %p686_p6 }
  0x40   :  { %516 = vmatpush3.bf16.msra.mxu0 %v583_v5  ;;  %536 = vmatpush3.bf16.msra.mxu1 %v592_v10 }
  0x41   :  { %517 = vmatprep.subr.bf16.mxu0 %v719_v0  ;;  %537 = vmatprep.subr.bf16.mxu1 %v719_v0 }
  0x44   :  { %518 = vmatpush3.bf16.msra.mxu0 %v584_v7  ;;  %538 = vmatpush3.bf16.msra.mxu1 %v593_v12 }
  0x45   :  { %519 = vmatprep.subr.bf16.mxu0 %v719_v0  ;;  %539 = vmatprep.subr.bf16.mxu1 %v719_v0 }
  0x48   :  { %520 = vmatpush3.bf16.msra.mxu0 %v585_v9  ;;  %540 = vmatpush3.bf16.msra.mxu1 %v594_v15 }
  0x49   :  { %521 = vmatprep.subr.bf16.mxu0 %v719_v0  ;;  %541 = vmatprep.subr.bf16.mxu1 %v719_v0 }
  0x4c   :  { %522 = vmatpush3.bf16.msra.mxu0 %v586_v11  ;;  %542 = vmatpush3.bf16.msra.mxu1 %v595_v16 }
  0x4d   :  { %523 = vmatprep.subr.bf16.mxu0 %v719_v0  ;;  %543 = vmatprep.subr.bf16.mxu1 %v719_v0 }
  0x50   :  { %524 = vmatpush3.bf16.msra.mxu0 %v587_v13  ;;  %544 = vmatpush3.bf16.msra.mxu1 %v596_v17 }
  0x51   :  { %549 = vmatprep.subr.bf16.mxu0 %v719_v0 }
  0x53   :  { %526 = vmatmul.mubr.bf16.vlgmr.msra.gmra.mxu0 %v588_v14 }
  0x54   :  { %565 = vmatprep.mubr.msk.bf16.mxu0 %vm720_vm0, %v719_v0  ;;  %550 = vmatpush3.bf16.msra.mxu0 %v597_v18 }
  0x55   :  { %551 = vmatprep.subr.bf16.mxu0 %v719_v0 }
  0x58   :  { %552 = vmatpush3.bf16.msra.mxu0 %v598_v19 }
  0x59   :  { %553 = vmatprep.subr.bf16.mxu0 %v719_v0 }
  0x5c   :  { %554 = vmatpush3.bf16.msra.mxu0 %v599_v20 }
  0x5d   :  { %555 = vmatprep.subr.bf16.mxu0 %v719_v0 }
  0x60   :  { %556 = vmatpush3.bf16.msra.mxu0 %v600_v21 }
  0x61   :  { %557 = vmatprep.subr.bf16.mxu0 %v719_v0 }
  0x64   :  { %558 = vmatpush3.bf16.msra.mxu0 %v601_v22 }
  0x65   :  { %559 = vmatprep.subr.bf16.mxu0 %v719_v0 }
  0x68   :  { %560 = vmatpush3.bf16.msra.mxu0 %v602_v33 }
  0x69   :  { %561 = vmatprep.subr.bf16.mxu0 %v719_v0 }
  0x6c   :  { %562 = vmatpush3.bf16.msra.mxu0 %v603_v34 }
  0x6d   :  { %563 = vmatprep.subr.bf16.mxu0 %v719_v0 }
  0x70   :  { %564 = vmatpush3.bf16.msra.mxu0 %v604_v35 }
 0x113   :  { %v196_v24 = vpop.f32.mrf.mxu0 }
 0x114   :  { %v197_v26 = vadd.f32 %v454_v23, %v196_v24 }
 0x115   :  { %v527_v25 = vpop.f32.mrf.mxu0 }
 0x116   :  { %v203_v30 = vmax.f32 %v197_v26, 0.0 }
 0x117   :  { %v199_v27 = vpop.f32.mrf.mxu0 }
 0x118   :  { %v200_v28 = vadd.f32 %v454_v23, %v199_v27 }
 0x119   :  { %v528_v29 = vpop.f32.mrf.mxu0 }
 0x11a   :  { %v204_v31 = vmax.f32 %v200_v28, 0.0 }
 0x11c   :  { %v205_v32 = vpack.c.bf16 %v204_v31, %v203_v30 }
 0x11e   :  { %546 = vmatmul.mubr.bf16.vlgmr.msra.gmra.mxu1 %v205_v32 }
 0x1de   :  { %v311_v37 = vpop.f32.mrf.mxu1 }
 0x1df   :  { %v312_v39 = vadd.f32 %v464_v36, %v311_v37 }
 0x1e0   :  { %v547_v38 = vpop.f32.mrf.mxu1 }
 0x1e1   :  { %v318_v43 = vmax.f32 %v312_v39, 0.0 }
 0x1e2   :  { %v314_v40 = vpop.f32.mrf.mxu1 }
 0x1e3   :  { %v315_v41 = vadd.f32 %v464_v36, %v314_v40 }
 0x1e4   :  { %v548_v42 = vpop.f32.mrf.mxu1 }
 0x1e5   :  { %v319_v44 = vmax.f32 %v315_v41, 0.0 }
 0x1e7   :  { %v320_v45 = vpack.c.bf16 %v319_v44, %v318_v43 }
 0x1e9   :  { %566 = vmatmul.mubr.bf16.vlgmr.msra.gmra.mxu0 %v320_v45 }
 0x2a9   :  { %v426_v47 = vpop.f32.mrf.mxu0 }
 0x2aa   :  { %v427_v48 = vadd.f32 %v473_v46, %v426_v47 }
 0x2ab   :  { %v567_v49 = vpop.f32.mrf.mxu0 }
 0x2ac   :  { %433 = vst [vmem:[#allocation10] sm:$0xff] %v427_v48 }
 0x2ad   :  { %v429_v50 = vpop.f32.mrf.mxu0 }
 0x2ae   :  { %v430_v51 = vadd.f32 %v473_v46, %v429_v50 }
 0x2af   :  { %v568_v52 = vpop.f32.mrf.mxu0 }
 0x2b0   :  { %434 = vst [vmem:[#allocation10 + $0x8] sm:$0xff] %v430_v51 }
 0x2b1   :  { %696 = shalt.err (!%p693_p10)
}
 0x2b2   :  { %s722_s26 = smov 128   ;;  %s723_s6 = smov 8  }
 0x2b3   :  { %446 = dma.vmem_to_hbm [thread:$0]  %s441_s25, 256, %s837_s7, [#allocation4], %s722_s26, %s722_s26, %s723_s6  }
 0x2b4   :  { %711 = dma.done.wait [#allocation4], 256  }
 0x2b5   :  { %712 = vsyncadd [#allocation4], 4294967040 }
 0x2b6   :  { %450 = vsyncpa [#allocation3], 1 }
 0x2b7   :  { %451 = vsyncpa [#allocation6], 1 }
 0x2b8   :  { %452 = vsyncpa [#allocation9], 1 }
 0x2b9   :  { %453 = vsyncpa [#allocation4], 1 }

</bundles_post_ra>
